<compile_context>
chip_gen: v5e
topology: v5e:2x2
jax: 0.10.0
libtpu: 0.0.40
codegen_flags: <defaults>
</compile_context>

<pallas_src>
import math

import jax
import jax.numpy as jnp
from jax.experimental import pallas as pl
from jax.experimental.pallas import tpu as pltpu

F_IN = 100     # logical feature width of the model
F_PAD = 128    # lane-padded feature width
OUT_DIM = 2    # final Linear(100, 2)


def _round_up(x, m):
    return (x + m - 1) // m * m


def _cdiv(a, b):
    return (a + b - 1) // b


def mlp_segsum_kernel(x_ref, batch_ref,
                      w1_ref, b1_ref, w2_ref, b2_ref, w3_ref, b3_ref,
                      out_ref):
    """Streamed body: 3x (Linear+ReLU) on one node tile, then segment-sum via a
    one-hot matmul into this core's resident [b_pad, 128] f32 accumulator."""
    f32 = jnp.float32
    i = pl.program_id(1)                      # node-tile (reduction) axis
    cdtype = w1_ref.dtype                     # bf16 by default

    @pl.when(i == 0)
    def _init():
        out_ref[...] = jnp.zeros_like(out_ref)

    x = x_ref[...]                                                    # [tile_n, 128]

    # nn.Sequential(Linear + ReLU x3): bf16 MXU operands, f32 accumulation.
    h = jnp.dot(x, w1_ref[...], preferred_element_type=f32) + b1_ref[...]
    h = jnp.maximum(h, 0.0).astype(cdtype)
    h = jnp.dot(h, w2_ref[...], preferred_element_type=f32) + b2_ref[...]
    h = jnp.maximum(h, 0.0).astype(cdtype)
    h = jnp.dot(h, w3_ref[...], preferred_element_type=f32) + b3_ref[...]
    h = jnp.maximum(h, 0.0).astype(cdtype)                            # [tile_n, 128]

    # Segment sums via one-hot matmul: onehot_T[g, n] = (batch[n] == g).
    tile_n = x.shape[0]
    b_pad = out_ref.shape[0]
    batch = batch_ref[...]                                            # [1, tile_n] int32
    graph_iota = jax.lax.broadcasted_iota(jnp.int32, (b_pad, tile_n), 0)
    onehot_t = (graph_iota == batch).astype(cdtype)                   # [b_pad, tile_n]
    out_ref[...] += jnp.dot(onehot_t, h, preferred_element_type=f32)  # [b_pad, 128]


def finalize_kernel(part_ref, scale_ref, w4_ref, b4_ref, out_ref):
    """Sum per-core partials, apply mean-pool + dropout scale, final Linear."""
    f32 = jnp.float32
    pooled = jnp.sum(part_ref[...], axis=0) * scale_ref[...]          # [b_pad, 128]
    out = jnp.dot(pooled.astype(w4_ref.dtype), w4_ref[...],
                  preferred_element_type=f32) + b4_ref[...]
    out_ref[...] = out.astype(out_ref.dtype)


def mlp_forward(x, batch, num_graphs, params, *, edge_index=None,
                dropout_key=None, training=True,
                tile_n=2048, num_cores=2, compute_dtype=jnp.bfloat16):
    """Forward pass of the MLP module. `edge_index` is accepted but unused
    (matches the torch forward)."""
    del edge_index
    N, f = x.shape
    assert f == F_IN, "model is fixed to 100 input features"
    f32 = jnp.float32

    # ---- tiling: split node axis across num_cores, 128-row granularity ------
    rows_per_core = _round_up(max(_cdiv(N, num_cores), 1), 128)
    tile_req = _round_up(max(128, min(int(tile_n), rows_per_core)), 128)
    tiles_per_core = _cdiv(rows_per_core, tile_req)
    tile_n = _round_up(_cdiv(rows_per_core, tiles_per_core), 128)
    num_tiles = num_cores * tiles_per_core
    n_pad = num_tiles * tile_n
    b_pad = max(8, _round_up(num_graphs, 8))

    # Pad x 100 -> 128 lanes directly in compute dtype (no f32 staging copy).
    x_p = jnp.zeros((n_pad, F_PAD), compute_dtype).at[:N, :F_IN].set(
        x.astype(compute_dtype))

    # Padded node rows get graph id -1 -> match no segment. Lane-dense layout.
    batch_i32 = batch.astype(jnp.int32)
    batch_p = jnp.full((n_pad,), -1, jnp.int32).at[:N].set(batch_i32)
    batch_p = batch_p.reshape(num_tiles, 1, tile_n)

    def pad_w(w, out_dim):
        return jnp.zeros((F_PAD, F_PAD), compute_dtype).at[
            :w.shape[0], :out_dim].set(w.astype(compute_dtype))

    def pad_b(b, out_dim):
        return jnp.zeros((1, F_PAD), f32).at[:, :out_dim].set(
            b.reshape(1, -1).astype(f32))

    w1 = pad_w(params["w1"], F_IN); b1 = pad_b(params["b1"], F_IN)
    w2 = pad_w(params["w2"], F_IN); b2 = pad_b(params["b2"], F_IN)
    w3 = pad_w(params["w3"], F_IN); b3 = pad_b(params["b3"], F_IN)
    w4 = pad_w(params["w4"], OUT_DIM); b4 = pad_b(params["b4"], OUT_DIM)

    # global_mean_pool denominator, computed once in the wrapper.
    counts = jnp.zeros((b_pad,), f32).at[batch_i32].add(1.0)
    inv_counts = 1.0 / jnp.maximum(counts, 1.0)

    # Inverted dropout mask (keep prob 0.5, survivors scaled by 2), folded with
    # 1/count into a single per-graph scale slab.
    # TODO(synk): dropout RNG stream differs from torch's dropout.
    if training:
        if dropout_key is None:
            dropout_key = jax.random.PRNGKey(0)
        keep = jax.random.bernoulli(dropout_key, 0.5, (b_pad, F_PAD))
        drop = keep.astype(f32) * 2.0
    else:
        drop = jnp.ones((b_pad, F_PAD), f32)
    scale = drop * inv_counts[:, None]

    tpc = tiles_per_core

    def resident(shape):
        return pl.BlockSpec(shape, lambda c, i, _s=len(shape): (0,) * _s)

    in_specs = [
        pl.BlockSpec((tile_n, F_PAD),
                     lambda c, i, _t=tpc: (c * _t + i, 0)),           # x (streamed)
        pl.BlockSpec((None, 1, tile_n),
                     lambda c, i, _t=tpc: (c * _t + i, 0, 0)),        # batch ids
        resident((F_PAD, F_PAD)), resident((1, F_PAD)),               # w1, b1
        resident((F_PAD, F_PAD)), resident((1, F_PAD)),               # w2, b2
        resident((F_PAD, F_PAD)), resident((1, F_PAD)),               # w3, b3
    ]
    # Per-core partial-sum slab, resident across the reduction axis.
    out_spec = pl.BlockSpec((None, b_pad, F_PAD), lambda c, i: (c, 0, 0))

    partials = pl.pallas_call(
        mlp_segsum_kernel,
        out_shape=jax.ShapeDtypeStruct((num_cores, b_pad, F_PAD), jnp.float32),
        grid=(num_cores, tiles_per_core),
        in_specs=in_specs,
        out_specs=out_spec,
        compiler_params=pltpu.CompilerParams(
            dimension_semantics=("parallel", "arbitrary"),
            vmem_limit_bytes=32 * 1024 * 1024),   # safe on v5e/v6e/v7x
    )(x_p, batch_p, w1, b1, w2, b2, w3, b3)

    # Tiny finalize kernel: whole arrays fit in VMEM, no grid needed.
    out_full = pl.pallas_call(
        finalize_kernel,
        out_shape=jax.ShapeDtypeStruct((b_pad, F_PAD), jnp.float32),
    )(partials, scale, w4, b4)

    return out_full[:num_graphs, :OUT_DIM]


def init_params(key):
    """Deterministic PyTorch-style Linear init: U(-1/sqrt(fan_in), 1/sqrt(fan_in)).
    Weights stored transposed as [in_features, out_features]."""
    def linear(k, fan_in, fan_out):
        kw, kb = jax.random.split(k)
        bound = 1.0 / math.sqrt(fan_in)
        w = jax.random.uniform(kw, (fan_in, fan_out), jnp.float32, -bound, bound)
        b = jax.random.uniform(kb, (1, fan_out), jnp.float32, -bound, bound)
        return w, b

    keys = jax.random.split(key, 4)
    p = {}
    p["w1"], p["b1"] = linear(keys[0], 100, 100)
    p["w2"], p["b2"] = linear(keys[1], 100, 100)
    p["w3"], p["b3"] = linear(keys[2], 100, 100)
    p["w4"], p["b4"] = linear(keys[3], 100, 2)
    return p


if __name__ == "__main__":
    key = jax.random.PRNGKey(0)
    kx, kp, kd = jax.random.split(key, 3)

    N_NODES, NUM_GRAPHS = 8, 2
    x = jax.random.normal(kx, (N_NODES, F_IN), jnp.float32)
    batch = jnp.array([0, 0, 0, 0, 1, 1, 1, 1], dtype=jnp.int32)
    edge_index = jnp.zeros((2, 0), jnp.int32)   # accepted by the torch forward, unused

    params = init_params(kp)
    out = mlp_forward(x, batch, NUM_GRAPHS, params,
                      edge_index=edge_index, dropout_key=kd)
    out = jax.block_until_ready(out)
    assert out.shape == (NUM_GRAPHS, OUT_DIM) and out.dtype == jnp.float32
    print("KERNEL_OK")
</pallas_src>

<mosaic_0001>
module attributes {stable_mosaic.version = 11 : i64} {
  func.func @mlp_segsum_kernel(%arg0: i32, %arg1: i32, %arg2: memref<128x128xbf16, #tpu.memory_space<vmem>>, %arg3: memref<1x1x128xi32, #tpu.memory_space<vmem>>, %arg4: memref<128x128xbf16, #tpu.memory_space<vmem>>, %arg5: memref<1x128xf32, #tpu.memory_space<vmem>>, %arg6: memref<128x128xbf16, #tpu.memory_space<vmem>>, %arg7: memref<1x128xf32, #tpu.memory_space<vmem>>, %arg8: memref<128x128xbf16, #tpu.memory_space<vmem>>, %arg9: memref<1x128xf32, #tpu.memory_space<vmem>>, %arg10: memref<1x8x128xf32, #tpu.memory_space<vmem>>) attributes {dimension_semantics = [#tpu.dimension_semantics<parallel>, #tpu.dimension_semantics<arbitrary>], iteration_bounds = array<i64: 2, 1>, scalar_prefetch = 0 : i64, scratch_operands = 0 : i64, tpu.core_type = #tpu.core_type<tc>, window_params = [{transform_indices = @transform_0, window_bounds = array<i64: 128, 128>}, {transform_indices = @transform_1, window_bounds = array<i64: 1, 1, 128>}, {pipeline_mode = #tpu.pipeline_mode<synchronous>, transform_indices = @transform_2, window_bounds = array<i64: 128, 128>}, {pipeline_mode = #tpu.pipeline_mode<synchronous>, transform_indices = @transform_3, window_bounds = array<i64: 1, 128>}, {pipeline_mode = #tpu.pipeline_mode<synchronous>, transform_indices = @transform_4, window_bounds = array<i64: 128, 128>}, {pipeline_mode = #tpu.pipeline_mode<synchronous>, transform_indices = @transform_5, window_bounds = array<i64: 1, 128>}, {pipeline_mode = #tpu.pipeline_mode<synchronous>, transform_indices = @transform_6, window_bounds = array<i64: 128, 128>}, {pipeline_mode = #tpu.pipeline_mode<synchronous>, transform_indices = @transform_7, window_bounds = array<i64: 1, 128>}, {transform_indices = @transform_8, window_bounds = array<i64: 1, 8, 128>}]} {
    %c0_i32 = arith.constant 0 : i32
    %0 = arith.cmpi eq, %arg1, %c0_i32 : i32
    %1 = arith.extui %0 : i1 to i32
    %c0_i32_0 = arith.constant 0 : i32
    %2 = arith.cmpi ne, %1, %c0_i32_0 : i32
    scf.if %2 {
      %cst_29 = arith.constant 0.000000e+00 : f32
      %43 = vector.broadcast %cst_29 : f32 to vector<8x128xf32>
      %c0_30 = arith.constant 0 : index
      %c0_31 = arith.constant 0 : index
      %c0_32 = arith.constant 0 : index
      %44 = vector.load %arg10[%c0_30, %c0_31, %c0_32] : memref<1x8x128xf32, #tpu.memory_space<vmem>>, vector<1x8x128xf32>
      %45 = vector.shape_cast %44 : vector<1x8x128xf32> to vector<8x128xf32>
      %46 = vector.shape_cast %43 : vector<8x128xf32> to vector<1x8x128xf32>
      tpu.vector_store %arg10[%c0_30, %c0_31, %c0_32], %46 {strides = array<i32>} : memref<1x8x128xf32, #tpu.memory_space<vmem>>, vector<1x8x128xf32>,
    } else {
    }
    %c0 = arith.constant 0 : index
    %c0_1 = arith.constant 0 : index
    %3 = vector.load %arg2[%c0, %c0_1] : memref<128x128xbf16, #tpu.memory_space<vmem>>, vector<128x128xbf16>
    %c0_2 = arith.constant 0 : index
    %c0_3 = arith.constant 0 : index
    %4 = vector.load %arg4[%c0_2, %c0_3] : memref<128x128xbf16, #tpu.memory_space<vmem>>, vector<128x128xbf16>
    %cst = arith.constant dense<0.000000e+00> : vector<128x128xf32>
    %5 = tpu.matmul %3, %4, %cst {dimension_numbers = #tpu.dot_dimension_numbers<[1], [0], [0], [1], [0, 0, 1, 1], [], []>} : vector<128x128xbf16>, vector<128x128xbf16>, vector<128x128xf32> -> vector<128x128xf32>
    %c0_4 = arith.constant 0 : index
    %c0_5 = arith.constant 0 : index
    %6 = vector.load %arg5[%c0_4, %c0_5] : memref<1x128xf32, #tpu.memory_space<vmem>>, vector<1x128xf32>
    %7 = vector.broadcast %6 : vector<1x128xf32> to vector<128x128xf32>
    %8 = arith.addf %5, %7 : vector<128x128xf32>
    %cst_6 = arith.constant 0.000000e+00 : f32
    %9 = vector.broadcast %cst_6 : f32 to vector<128x128xf32>
    %10 = arith.maximumf %8, %9 : vector<128x128xf32>
    %11 = arith.truncf %10 : vector<128x128xf32> to vector<128x128xbf16>
    %c0_7 = arith.constant 0 : index
    %c0_8 = arith.constant 0 : index
    %12 = vector.load %arg6[%c0_7, %c0_8] : memref<128x128xbf16, #tpu.memory_space<vmem>>, vector<128x128xbf16>
    %cst_9 = arith.constant dense<0.000000e+00> : vector<128x128xf32>
    %13 = tpu.matmul %11, %12, %cst_9 {dimension_numbers = #tpu.dot_dimension_numbers<[1], [0], [0], [1], [0, 0, 1, 1], [], []>} : vector<128x128xbf16>, vector<128x128xbf16>, vector<128x128xf32> -> vector<128x128xf32>
    %c0_10 = arith.constant 0 : index
    %c0_11 = arith.constant 0 : index
    %14 = vector.load %arg7[%c0_10, %c0_11] : memref<1x128xf32, #tpu.memory_space<vmem>>, vector<1x128xf32>
    %15 = vector.broadcast %14 : vector<1x128xf32> to vector<128x128xf32>
    %16 = arith.addf %13, %15 : vector<128x128xf32>
    %cst_12 = arith.constant 0.000000e+00 : f32
    %17 = vector.broadcast %cst_12 : f32 to vector<128x128xf32>
    %18 = arith.maximumf %16, %17 : vector<128x128xf32>
    %19 = arith.truncf %18 : vector<128x128xf32> to vector<128x128xbf16>
    %c0_13 = arith.constant 0 : index
    %c0_14 = arith.constant 0 : index
    %20 = vector.load %arg8[%c0_13, %c0_14] : memref<128x128xbf16, #tpu.memory_space<vmem>>, vector<128x128xbf16>
    %cst_15 = arith.constant dense<0.000000e+00> : vector<128x128xf32>
    %21 = tpu.matmul %19, %20, %cst_15 {dimension_numbers = #tpu.dot_dimension_numbers<[1], [0], [0], [1], [0, 0, 1, 1], [], []>} : vector<128x128xbf16>, vector<128x128xbf16>, vector<128x128xf32> -> vector<128x128xf32>
    %c0_16 = arith.constant 0 : index
    %c0_17 = arith.constant 0 : index
    %22 = vector.load %arg9[%c0_16, %c0_17] : memref<1x128xf32, #tpu.memory_space<vmem>>, vector<1x128xf32>
    %23 = vector.broadcast %22 : vector<1x128xf32> to vector<128x128xf32>
    %24 = arith.addf %21, %23 : vector<128x128xf32>
    %cst_18 = arith.constant 0.000000e+00 : f32
    %25 = vector.broadcast %cst_18 : f32 to vector<128x128xf32>
    %26 = arith.maximumf %24, %25 : vector<128x128xf32>
    %27 = arith.truncf %26 : vector<128x128xf32> to vector<128x128xbf16>
    %c0_19 = arith.constant 0 : index
    %c0_20 = arith.constant 0 : index
    %c0_21 = arith.constant 0 : index
    %28 = vector.load %arg3[%c0_19, %c0_20, %c0_21] : memref<1x1x128xi32, #tpu.memory_space<vmem>>, vector<1x1x128xi32>
    %29 = vector.shape_cast %28 : vector<1x1x128xi32> to vector<1x128xi32>
    %30 = tpu.iota {dimensions = array<i32: 0>} : vector<8x128xi32>
    %31 = vector.broadcast %29 : vector<1x128xi32> to vector<8x128xi32>
    %32 = arith.cmpi eq, %30, %31 : vector<8x128xi32>
    %33 = arith.extui %32 : vector<8x128xi1> to vector<8x128xi32>
    %34 = arith.sitofp %33 : vector<8x128xi32> to vector<8x128xf32>
    %35 = arith.truncf %34 : vector<8x128xf32> to vector<8x128xbf16>
    %c0_22 = arith.constant 0 : index
    %c0_23 = arith.constant 0 : index
    %c0_24 = arith.constant 0 : index
    %36 = vector.load %arg10[%c0_22, %c0_23, %c0_24] : memref<1x8x128xf32, #tpu.memory_space<vmem>>, vector<1x8x128xf32>
    %37 = vector.shape_cast %36 : vector<1x8x128xf32> to vector<8x128xf32>
    %cst_25 = arith.constant dense<0.000000e+00> : vector<8x128xf32>
    %38 = tpu.matmul %35, %27, %cst_25 {dimension_numbers = #tpu.dot_dimension_numbers<[1], [0], [0], [1], [0, 0, 1, 1], [], []>} : vector<8x128xbf16>, vector<128x128xbf16>, vector<8x128xf32> -> vector<8x128xf32>
    %39 = arith.addf %37, %38 : vector<8x128xf32>
    %c0_26 = arith.constant 0 : index
    %c0_27 = arith.constant 0 : index
    %c0_28 = arith.constant 0 : index
    %40 = vector.load %arg10[%c0_26, %c0_27, %c0_28] : memref<1x8x128xf32, #tpu.memory_space<vmem>>, vector<1x8x128xf32>
    %41 = vector.shape_cast %40 : vector<1x8x128xf32> to vector<8x128xf32>
    %42 = vector.shape_cast %39 : vector<8x128xf32> to vector<1x8x128xf32>
    tpu.vector_store %arg10[%c0_26, %c0_27, %c0_28], %42 {strides = array<i32>} : memref<1x8x128xf32, #tpu.memory_space<vmem>>, vector<1x8x128xf32>,
    return
  }
  func.func @transform_0(%arg0: i32, %arg1: i32) -> (i32, i32) {
    %c1_i32 = arith.constant 1 : i32
    %0 = arith.muli %arg0, %c1_i32 : i32
    %1 = arith.addi %0, %arg1 : i32
    %c0_i32 = arith.constant 0 : i32
    %c0_i32_0 = arith.constant 0 : i32
    return %1, %c0_i32 : i32, i32
  }
  func.func @transform_1(%arg0: i32, %arg1: i32) -> (i32, i32, i32) {
    %c1_i32 = arith.constant 1 : i32
    %0 = arith.muli %arg0, %c1_i32 : i32
    %1 = arith.addi %0, %arg1 : i32
    %c0_i32 = arith.constant 0 : i32
    %c0_i32_0 = arith.constant 0 : i32
    %c0_i32_1 = arith.constant 0 : i32
    return %1, %c0_i32, %c0_i32_0 : i32, i32, i32
  }
  func.func @transform_2(%arg0: i32, %arg1: i32) -> (i32, i32) {
    %c0_i32 = arith.constant 0 : i32
    %c0_i32_0 = arith.constant 0 : i32
    %c0_i32_1 = arith.constant 0 : i32
    return %c0_i32, %c0_i32_0 : i32, i32
  }
  func.func @transform_3(%arg0: i32, %arg1: i32) -> (i32, i32) {
    %c0_i32 = arith.constant 0 : i32
    %c0_i32_0 = arith.constant 0 : i32
    %c0_i32_1 = arith.constant 0 : i32
    return %c0_i32, %c0_i32_0 : i32, i32
  }
  func.func @transform_4(%arg0: i32, %arg1: i32) -> (i32, i32) {
    %c0_i32 = arith.constant 0 : i32
    %c0_i32_0 = arith.constant 0 : i32
    %c0_i32_1 = arith.constant 0 : i32
    return %c0_i32, %c0_i32_0 : i32, i32
  }
  func.func @transform_5(%arg0: i32, %arg1: i32) -> (i32, i32) {
    %c0_i32 = arith.constant 0 : i32
    %c0_i32_0 = arith.constant 0 : i32
    %c0_i32_1 = arith.constant 0 : i32
    return %c0_i32, %c0_i32_0 : i32, i32
  }
  func.func @transform_6(%arg0: i32, %arg1: i32) -> (i32, i32) {
    %c0_i32 = arith.constant 0 : i32
    %c0_i32_0 = arith.constant 0 : i32
    %c0_i32_1 = arith.constant 0 : i32
    return %c0_i32, %c0_i32_0 : i32, i32
  }
  func.func @transform_7(%arg0: i32, %arg1: i32) -> (i32, i32) {
    %c0_i32 = arith.constant 0 : i32
    %c0_i32_0 = arith.constant 0 : i32
    %c0_i32_1 = arith.constant 0 : i32
    return %c0_i32, %c0_i32_0 : i32, i32
  }
  func.func @transform_8(%arg0: i32, %arg1: i32) -> (i32, i32, i32) {
    %c0_i32 = arith.constant 0 : i32
    %c0_i32_0 = arith.constant 0 : i32
    %c0_i32_1 = arith.constant 0 : i32
    return %arg0, %c0_i32, %c0_i32_0 : i32, i32, i32
  }
}

</mosaic_0001>

<bundles_post_ra>
// kernel: tpu_custom_call.1
= control target key start
LH: loop header
LB: loop body
LE: loop exit
PB: predicated region body
PF: predicated region fallthrough
CT: control target
= control target key end

     0   :  { %s1905_s0 = inlined_call_operand.hbm [shape: bf16[256,128], index: 0, kind: input, shape index: {}]   ;;  %s1906_s1 = inlined_call_operand.hbm [shape: s32[2,1,128], index: 1, kind: input, shape index: {}]   ;;  %s1907_s2 = inlined_call_operand.hbm [shape: bf16[128,128], index: 2, kind: input, shape index: {}]   ;;  %s1908_s3 = inlined_call_operand.vmem [shape: f32[1,128], index: 3, kind: input, shape index: {}]   ;;  %s1909_s4 = inlined_call_operand.hbm [shape: bf16[128,128], index: 4, kind: input, shape index: {}]   ;;  %s1910_s5 = inlined_call_operand.vmem [shape: f32[1,128], index: 5, kind: input, shape index: {}]   ;;  %s1911_s6 = inlined_call_operand.hbm [shape: bf16[128,128], index: 6, kind: input, shape index: {}]   ;;  %s1912_s7 = inlined_call_operand.vmem [shape: f32[1,128], index: 7, kind: input, shape index: {}]   ;;  %s1913_s8 = inlined_call_operand.hbm [shape: f32[2,8,128], index: 8, kind: output, shape index: {}]  }
   0x1   :  { %1921 = sst [smem:[#allocation22_spill]] %s1907_s2 }
   0x2   :  { %1922 = sst [smem:[#allocation23_spill]] %s1909_s4 }
   0x3   :  { %1923 = sst [smem:[#allocation24_spill]] %s1911_s6 }
   0x4   :  { %1924 = sst [smem:[#allocation25_spill]] %s1913_s8 }
   0x5   :  { %13 = vsyncpa [#allocation3], 0 }
   0x6   :  { %15 = vsyncpa [#allocation3 + $0x1], 0 }
   0x7   :  { %16 = vsyncpa [#allocation6], 0 }
   0x8   :  { %18 = vsyncpa [#allocation6 + $0x1], 0 }
   0x9   :  { %19 = vsyncpa [#allocation9], 0 }
   0xa   :  { %20 = vsyncpa [#allocation4], 0 }
   0xb   :  { %22 = vsyncpa [#allocation4 + $0x1], 0  ;;  %s1677_s27 = smov 0   ;;  %s1679_s28 = smov 0  }
   0xc   :  { %s1681_s29 = smov 0   ;;  %s1683_s30 = smov 0  }
   0xd   :  { %s1685_s9 = smov 0   ;;  %s1687_s10 = smov 0  }
   0xe LB: > { %1925 = sst [smem:[#allocation17_spill]] %s1604_s27  ;;  %s1708_s11 = sadd.s32 4294967295, %s1624_s10   ;;  %s1624_s10 = sphi %s1687_s10, %s28_s10   ;;  %s1620_s9 = sphi %s1685_s9, %s1950_s9   ;;  %s1616_s30 = sphi %s1683_s30, %s1949_s30   ;;  %s1612_s29 = sphi %s1681_s29, %s1945_s29   ;;  %s1608_s28 = sphi %s1679_s28, %s1948_s28   ;;  %s1604_s27 = sphi %s1677_s27, %s1947_s27  }
   0xf   : > { %1926 = sst [smem:[#allocation18_spill]] %s1612_s29  ;;  %s1091_s12 = sadd.s32 4294967294, %s1624_s10  }
  0x10   : > { %p62_p0 = scmp.ne.s32.totalorder %s1608_s28, %s1604_s27  ;;  %p63_p1 = scmp.eq.s32.totalorder %s1708_s11, 0 }
  0x11   : > { %p240_p2 = scmp.eq.s32.totalorder %s1708_s11, 1  ;;  %p246_p3 = scmp.eq.s32.totalorder %s1091_s12, 1 }
  0x12   : > { %p1717_p4 = por %p63_p1, %p62_p0  ;;  %p1092_p5 = scmp.ge.s32.totalorder %s1624_s10, 1 }
  0x13   : > { %p1722_p6 = por %p246_p3, %p62_p0  ;;  %p253_p7 = scmp.lt.s32.totalorder %s1624_s10, 3 }
  0x14   : > { %s1930_s2 = sld [smem:[#allocation22_spill]]  ;;  %s1626_s19 = smov [#allocation7]  }
  0x15   : > { %s1928_s14 = scalar_select %p1722_p6, 1, 0 }
  0x16   : > { %p1730_p8 = pnand %p1092_p5, %p253_p7  ;;  %s266_s20 = sshll.u32 %s1626_s19, 4  ;;  %s267_s20 = int_to_ptr.vmem [resolvable:$true] %s266_s20 }
  0x17   : > { %1929 = sst [smem:[#allocation19_spill]] %s1928_s14  ;;  %p1096_p11 = scmp.ge.s32.totalorder %s1624_s10, 2 }
  0x18   : > { %p1292_p9 = pneg %p1730_p8  ;;  %s1933_s4 = sld [smem:[#allocation23_spill]] }
  0x19   : > { %s1914_s25 = smov 64   ;;  %s1915_s26 = smov 4  }
  0x1a   : > { %s264_s17 = sshll.u32 %s1930_s2, 4  ;;  %p1738_p10 = pnand %p1292_p9, %p63_p1  ;;  %s265_s17 = int_to_ptr.hbm [resolvable:$true] %s264_s17 }
  0x1b   : > { %s1629_s12 = smov [#allocation8]   ;;  %s1934_s6 = sld [smem:[#allocation24_spill]] }
  0x1c   : > { %1295 = dma.hbm_to_vmem [thread:$0]  (!%p1738_p10), %s265_s17, 1024, %s267_s20, [#allocation6], %s1914_s25, %s1914_s25, %s1915_s26  }
  0x1d   : > { %s283_s15 = sshll.u32 %s1629_s12, 4  ;;  %s1630_s23 = smov [#allocation10]   ;;  %s284_s15 = int_to_ptr.vmem [resolvable:$true] %s283_s15 }
  0x1e   : > { %s281_s24 = sshll.u32 %s1933_s4, 4  ;;  %s300_s2 = sshll.u32 %s1630_s23, 4  ;;  %s282_s24 = int_to_ptr.hbm [resolvable:$true] %s281_s24  ;;  %s301_s2 = int_to_ptr.vmem [resolvable:$true] %s300_s2 }
  0x1f   : > { %1298 = dma.hbm_to_vmem [thread:$0]  (!%p1738_p10), %s282_s24, 1024, %s284_s15, [#allocation9], %s1914_s25, %s1914_s25, %s1915_s26  }
  0x20   : > { %s40_s17 = sadd.s32 1, %s1620_s9  ;;  %s49_s20 = sadd.s32 1, %s1612_s29 }
  0x21   : > { %s298_s22 = sshll.u32 %s1934_s6, 4  ;;  %p42_p12 = scmp.ge.s32.totalorder %s40_s17, 2  ;;  %s299_s22 = int_to_ptr.hbm [resolvable:$true] %s298_s22 }
  0x22   : > { %1301 = dma.hbm_to_vmem [thread:$0]  (!%p1738_p10), %s299_s22, 1024, %s301_s2, [#allocation9], %s1914_s25, %s1914_s25, %s1915_s26  }
  0x23   : > { %p56_p13 = scmp.ne.s32.totalorder %s1612_s29, %s1608_s28  ;;  %p57_p0 = scmp.eq.s32.totalorder %s1624_s10, 0 }
  0x24   : > { %s1952_s17 = smov (%p42_p12, %s40_s17), 0  ;;  %p1316_p7 = scmp.lt.s32.totalorder %s1624_s10, 2 }
  0x25   : > { %1935 = sst [smem:[#allocation20_spill]] %s1952_s17  ;;  %p1771_p3 = por %p57_p0, %p56_p13 }
  0x26   : > { %p1777_p5 = por %p240_p2, %p56_p13  ;;  %s46_s2 = ssub.s32 %s1620_s9, %s1952_s17 }
  0x27   : > { %p47_p9 = scmp.eq.s32.totalorder %s46_s2, 0  ;;  %s317_s12 = sand.u32 1, %s1612_s29  }
  0x28   : > { %s1097_s15 = sshll.u32 %s317_s12, 6  ;;  %s1241_s19 = sshll.u32 %s1620_s9, 6 }
  0x29   : > { %s1786_s16 = scalar_select %p47_p9, %s1612_s29, %s49_s20  }
  0x2a   : > { %s327_s25 = scalar_lea.hbm %s1905_s0, %s1241_s19  ;;  %s321_s26 = scalar_lea.vmem [#allocation2], %s1097_s15 }
  0x2b   : > { %1938 = sst [smem:[#allocation21_spill]] %s1786_s16  ;;  %s330_s4 = sshll.u32 %s321_s26, 4  ;;  %s331_s4 = int_to_ptr.vmem [resolvable:$true] %s330_s4 }
  0x2c   : > { %s328_s6 = sshll.u32 %s327_s25, 4  ;;  %p1303_p2 = pnand %p1316_p7, %p1771_p3  ;;  %s329_s6 = int_to_ptr.hbm [resolvable:$true] %s328_s6 }
  0x2d   : > { %s340_s17 = sand.u32 1, %s1624_s10   ;;  %s318_s14 = scalar_lea.sflag [#allocation3], %s317_s12 }
  0x2e   : > { %s1939_s27 = smov 4   ;;  %s1940_s2 = smov 64  }
  0x2f   : > { %1305 = dma.hbm_to_vmem [thread:$0]  (!%p1303_p2), %s329_s6, 1024, %s331_s4, %s318_s14, %s1940_s2, %s1940_s2, %s1939_s27  }
  0x30   : > { %s347_s29 = scalar_lea.hbm %s1906_s1, %s1620_s9  ;;  %s343_s8 = scalar_lea.vmem [#allocation5], %s317_s12 }
  0x31   : > { %s351_s22 = sshll.u32 %s343_s8, 4  ;;  %s349_s19 = sshll.u32 %s347_s29, 4  ;;  %s352_s22 = int_to_ptr.vmem [resolvable:$true] %s351_s22  ;;  %s350_s19 = int_to_ptr.hbm [resolvable:$true] %s349_s19 }
  0x32   : > { %s341_s25 = scalar_lea.sflag [#allocation6], %s340_s17  ;;  %360 = sbr.rel (%p1730_p8) target bundleno = 804 (0x324), region = 52 }
  0x33   : > { %1308 = dma.hbm_to_vmem [thread:$0]  (!%p1303_p2), %s350_s19, 16, %s352_s22, %s341_s25  }
  0x34   : > { %s1805_s26 = sand.u32 (!%p1730_p8), 1, %s1608_s28  }
  0x35   : > { %s1101_s4 = sshll.u32 (!%p1730_p8), %s1805_s26, 6  ;;  %s363_s6 = scalar_lea.sflag (!%p1730_p8), [#allocation3], %s1805_s26 }
  0x36   : > { %s1809_s27 = scalar_lea.vmem (!%p1730_p8), [#allocation2], %s1101_s4 }
  0x37   : > { %1583 = dma.done.wait (%p1717_p4), %s363_s6, 1024  }
  0x38   : > { %1585 = vsyncadd (%p1717_p4), %s363_s6, 4294966272  ;;  %s372_s8 = sand.u32 1, %s1708_s11   ;;  %s375_s14 = scalar_lea.vmem [#allocation5], %s1805_s26 }
  0x39   : > { %s373_s29 = scalar_lea.sflag [#allocation6], %s372_s8 }
  0x3a   : > { %1587 = dma.done.wait (%p1717_p4), %s373_s29, 16  }
  0x3b   : > { %1589 = vsyncadd (%p1717_p4), %s373_s29, 4294967280 }
  0x3c   : > { %1591 = dma.done.wait (%p63_p1), [#allocation6], 1024  }
  0x3d   : > { %1593 = vsyncadd (%p63_p1), [#allocation6], 4294966272 }
  0x3e   : > { %1595 = dma.done.wait (%p63_p1), [#allocation9], 2048  }
  0x3f   : > { %1597 = vsyncadd (%p63_p1), [#allocation9], 4294965248  ;;  %v1257_v0 = vld [vmem:[#allocation7 + $0x38] sm:$0xff]  ;;  %v1256_v1 = vld [vmem:[#allocation7 + $0x30] sm:$0xff]  ;;  %s1238_s15 = sshll.u32 %s1616_s30, 3  ;;  %s1105_s16 = sshll.u32 %s1805_s26, 3 }
  0x40   : > { %568 = vmatpush.bf16.msra.mxu0 %v1257_v0  ;;  %v1255_v2 = vld [vmem:[#allocation7 + $0x28] sm:$0xff]  ;;  %v1254_v3 = vld [vmem:[#allocation7 + $0x20] sm:$0xff]  ;;  %v1253_v4 = vld [vmem:[#allocation7 + $0x18] sm:$0xff]  ;;  %s1941_s20 = sld [smem:[#allocation25_spill]]  ;;  %s427_s19 = scalar_lea.vmem [#allocation11], %s1105_s16 }
  0x41   : > { %v1252_v5 = vld [vmem:[#allocation7 + $0x10] sm:$0xff]  ;;  %v1251_v6 = vld [vmem:[#allocation7 + $0x8] sm:$0xff]  ;;  %v1250_v7 = vld [vmem:[#allocation7] sm:$0xff]  ;;  %s960_s25 = sshll.u32 %s427_s19, 4  ;;  %s948_s6 = scalar_lea.sflag [#allocation4], %s1805_s26  ;;  %s961_s25 = int_to_ptr.vmem [resolvable:$true] %s960_s25 }
  0x42   : > { %v1242_v8 = vld [vmem:[%s1809_s27] sm:$0xff]  ;;  %v1243_v9 = vld [vmem:[%s1809_s27 + $0x8] sm:$0xff]  ;;  %v1244_v10 = vld [vmem:[%s1809_s27 + $0x10] sm:$0xff] }
  0x43   : > { %v1245_v11 = vld [vmem:[%s1809_s27 + $0x18] sm:$0xff]  ;;  %v1246_v12 = vld [vmem:[%s1809_s27 + $0x20] sm:$0xff]  ;;  %v1247_v14 = vld [vmem:[%s1809_s27 + $0x28] sm:$0xff] }
  0x44   : > { %569 = vmatpush.bf16.msra.mxu0 %v1256_v1  ;;  %v1265_v13 = vld [vmem:[#allocation8 + $0x38] sm:$0xff]  ;;  %v1264_v15 = vld [vmem:[#allocation8 + $0x30] sm:$0xff]  ;;  %v1263_v16 = vld [vmem:[#allocation8 + $0x28] sm:$0xff] }
  0x45   : > { %709 = vmatpush.bf16.msra.mxu1 %v1265_v13  ;;  %v1262_v17 = vld [vmem:[#allocation8 + $0x20] sm:$0xff]  ;;  %v1261_v18 = vld [vmem:[#allocation8 + $0x18] sm:$0xff]  ;;  %v1248_v19 = vld [vmem:[%s1809_s27 + $0x30] sm:$0xff] }
  0x46   : > { %v1260_v20 = vld [vmem:[#allocation8 + $0x10] sm:$0xff]  ;;  %v1259_v21 = vld [vmem:[#allocation8 + $0x8] sm:$0xff]  ;;  %v1258_v22 = vld [vmem:[#allocation8] sm:$0xff]  ;;  %s958_s22 = scalar_lea.hbm %s1941_s20, %s1238_s15 }
  0x47   : > { %v1249_v23 = vld [vmem:[%s1809_s27 + $0x38] sm:$0xff]  ;;  %v1840_v25 = vld [vmem:[%s1908_s3] ss:$0 sm:$0xff]  ;;  %s962_s4 = sshll.u32 %s958_s22, 4  ;;  %s963_s4 = int_to_ptr.hbm [resolvable:$true] %s962_s4 }
  0x48   : > { %570 = vmatpush.bf16.msra.mxu0 %v1255_v2  ;;  %v1273_v0 = vld [vmem:[#allocation10 + $0x38] sm:$0xff]  ;;  %s1544_s27 = sshra.s32 %s963_s4, 4  ;;  %s1545_s27 = int_to_ptr.hbm [resolvable:$true] %s1544_s27 }
  0x49   : > { %710 = vmatpush.bf16.msra.mxu1 %v1264_v15  ;;  %850 = vmatpush.bf16.msra.mxu2 %v1273_v0  ;;  %v1268_v15 = vld [vmem:[#allocation10 + $0x10] sm:$0xff]  ;;  %s1546_s8 = scalar_lea.hbm %s1545_s27, 8  ;;  %p1551_p10 = scmp.lt.s32.totalorder %s1545_s27, %s1941_s20 }
  0x4a   : > { %p1547_p1 = scmp.ne.s32.totalorder %s1545_s27, %s1546_s8 }
  0x4c   : > { %571 = vmatpush.bf16.msra.mxu0 %v1254_v3  ;;  %p1548_p4 = pnand %p1547_p1, %p1777_p5 }
  0x4d   : > { %711 = vmatpush.bf16.msra.mxu1 %v1263_v16 }
  0x4e   : > { %p1549_p8 = pneg %p1548_p4 }
  0x50   : > { %572 = vmatpush.bf16.msra.mxu0 %v1253_v4  ;;  %v1272_v4 = vld [vmem:[#allocation10 + $0x30] sm:$0xff] }
  0x51   : > { %712 = vmatpush.bf16.msra.mxu1 %v1262_v17  ;;  %851 = vmatpush.bf16.msra.mxu2 %v1272_v4  ;;  %v1267_v17 = vld [vmem:[#allocation10 + $0x8] sm:$0xff] }
  0x54   : > { %573 = vmatpush.bf16.msra.mxu0 %v1252_v5 }
  0x55   : > { %713 = vmatpush.bf16.msra.mxu1 %v1261_v18  ;;  %v1266_v18 = vld [vmem:[#allocation10] sm:$0xff] }
  0x58   : > { %574 = vmatpush.bf16.msra.mxu0 %v1251_v6  ;;  %v1271_v6 = vld [vmem:[#allocation10 + $0x28] sm:$0xff] }
  0x59   : > { %714 = vmatpush.bf16.msra.mxu1 %v1260_v20  ;;  %852 = vmatpush.bf16.msra.mxu2 %v1271_v6 }
  0x5c   : > { %575 = vmatpush.bf16.msra.mxu0 %v1250_v7  ;;  %v1270_v7 = vld [vmem:[#allocation10 + $0x20] sm:$0xff] }
  0x5d   : > { %715 = vmatpush.bf16.msra.mxu1 %v1259_v21  ;;  %853 = vmatpush.bf16.msra.mxu2 %v1270_v7 }
  0x5f   : > { %576 = vmatmul.bf16.vlgmr.msra.gmra.mxu0 %v1242_v8 }
  0x61   : > { %716 = vmatpush.bf16.msra.mxu1 %v1258_v22 }
  0x6f   : > { %581 = vmatmul.bf16.gmra.mxu0 %v1243_v9 }
  0x7f   : > { %586 = vmatmul.bf16.gmra.mxu0 %v1244_v10 }
  0x8f   : > { %591 = vmatmul.bf16.gmra.mxu0 %v1245_v11  ;;  %v1269_v11 = vld [vmem:[#allocation10 + $0x18] sm:$0xff] }
  0x90   : > { %854 = vmatpush.bf16.msra.mxu2 %v1269_v11 }
  0x94   : > { %855 = vmatpush.bf16.msra.mxu2 %v1268_v15 }
  0x98   : > { %856 = vmatpush.bf16.msra.mxu2 %v1267_v17 }
  0x9c   : > { %857 = vmatpush.bf16.msra.mxu2 %v1266_v18 }
  0x9f   : > { %596 = vmatmul.bf16.gmra.mxu0 %v1246_v12 }
  0xaf   : > { %601 = vmatmul.bf16.gmra.mxu0 %v1247_v14 }
  0xbf   : > { %606 = vmatmul.bf16.gmra.mxu0 %v1248_v19 }
  0xcf   : > { %611 = vmatmul.bf16.gmra.mxu0 %v1249_v23 }
  0xdc   : > { %v577_v24 = vpop.f32.mrf.mxu0 }
  0xdd   : > { %v578_v26 = vadd.f32 %v1840_v25, %v577_v24 }
  0xdf   : > { %v617_v29 = vmax.f32 %v578_v26, 0.0 }
  0xe4   : > { %v579_v27 = vpop.f32.mrf.mxu0 }
  0xe5   : > { %v580_v28 = vadd.f32 %v1840_v25, %v579_v27  ;;  %v1377_v27 = vld [vmem:[%s1910_s5] ss:$0 sm:$0xff] }
  0xe7   : > { %v618_v30 = vmax.f32 %v580_v28, 0.0 }
  0xe9   : > { %v633_v31 = vpack.c.bf16 %v618_v30, %v617_v29 }
  0xeb   : > { %717 = vmatmul.bf16.vlgmr.msra.gmra.mxu1 %v633_v31 }
  0xec   : > { %v582_v32 = vpop.f32.mrf.mxu0 }
  0xed   : > { %v583_v33 = vadd.f32 %v1840_v25, %v582_v32 }
  0xef   : > { %v619_v36 = vmax.f32 %v583_v33, 0.0 }
  0xf4   : > { %v584_v34 = vpop.f32.mrf.mxu0 }
  0xf5   : > { %v585_v35 = vadd.f32 %v1840_v25, %v584_v34 }
  0xf7   : > { %v620_v37 = vmax.f32 %v585_v35, 0.0 }
  0xf9   : > { %v634_v38 = vpack.c.bf16 %v620_v37, %v619_v36 }
  0xfb   : > { %722 = vmatmul.bf16.gmra.mxu1 %v634_v38 }
  0xfc   : > { %v587_v39 = vpop.f32.mrf.mxu0 }
  0xfd   : > { %v588_v40 = vadd.f32 %v1840_v25, %v587_v39 }
  0xff   : > { %v621_v43 = vmax.f32 %v588_v40, 0.0 }
 0x104   : > { %v589_v41 = vpop.f32.mrf.mxu0 }
 0x105   : > { %v590_v42 = vadd.f32 %v1840_v25, %v589_v41 }
 0x107   : > { %v622_v44 = vmax.f32 %v590_v42, 0.0 }
 0x109   : > { %v635_v45 = vpack.c.bf16 %v622_v44, %v621_v43 }
 0x10b   : > { %727 = vmatmul.bf16.gmra.mxu1 %v635_v45 }
 0x10c   : > { %v592_v46 = vpop.f32.mrf.mxu0 }
 0x10d   : > { %v593_v47 = vadd.f32 %v1840_v25, %v592_v46 }
 0x10f   : > { %v623_v50 = vmax.f32 %v593_v47, 0.0 }
 0x114   : > { %v594_v48 = vpop.f32.mrf.mxu0 }
 0x115   : > { %v595_v49 = vadd.f32 %v1840_v25, %v594_v48 }
 0x117   : > { %v624_v51 = vmax.f32 %v595_v49, 0.0 }
 0x119   : > { %v636_v52 = vpack.c.bf16 %v624_v51, %v623_v50 }
 0x11b   : > { %732 = vmatmul.bf16.gmra.mxu1 %v636_v52 }
 0x11c   : > { %v597_v53 = vpop.f32.mrf.mxu0 }
 0x11d   : > { %v598_v54 = vadd.f32 %v1840_v25, %v597_v53 }
 0x11f   : > { %v625_v57 = vmax.f32 %v598_v54, 0.0 }
 0x124   : > { %v599_v55 = vpop.f32.mrf.mxu0 }
 0x125   : > { %v600_v56 = vadd.f32 %v1840_v25, %v599_v55 }
 0x127   : > { %v626_v58 = vmax.f32 %v600_v56, 0.0 }
 0x129   : > { %v637_v59 = vpack.c.bf16 %v626_v58, %v625_v57 }
 0x12b   : > { %737 = vmatmul.bf16.gmra.mxu1 %v637_v59 }
 0x12c   : > { %v602_v60 = vpop.f32.mrf.mxu0 }
 0x12d   : > { %v603_v61 = vadd.f32 %v1840_v25, %v602_v60 }
 0x12f   : > { %v627_v1 = vmax.f32 %v603_v61, 0.0 }
 0x134   : > { %v604_v62 = vpop.f32.mrf.mxu0 }
 0x135   : > { %v605_v63 = vadd.f32 %v1840_v25, %v604_v62 }
 0x137   : > { %v628_v2 = vmax.f32 %v605_v63, 0.0 }
 0x139   : > { %v638_v3 = vpack.c.bf16 %v628_v2, %v627_v1 }
 0x13b   : > { %742 = vmatmul.bf16.gmra.mxu1 %v638_v3 }
 0x13c   : > { %v607_v5 = vpop.f32.mrf.mxu0 }
 0x13d   : > { %v608_v8 = vadd.f32 %v1840_v25, %v607_v5 }
 0x13f   : > { %v629_v12 = vmax.f32 %v608_v8, 0.0 }
 0x144   : > { %v609_v9 = vpop.f32.mrf.mxu0 }
 0x145   : > { %v610_v10 = vadd.f32 %v1840_v25, %v609_v9 }
 0x147   : > { %v630_v13 = vmax.f32 %v610_v10, 0.0 }
 0x149   : > { %v639_v14 = vpack.c.bf16 %v630_v13, %v629_v12 }
 0x14b   : > { %747 = vmatmul.bf16.gmra.mxu1 %v639_v14 }
 0x14c   : > { %v612_v16 = vpop.f32.mrf.mxu0 }
 0x14d   : > { %v613_v19 = vadd.f32 %v1840_v25, %v612_v16 }
 0x14f   : > { %v631_v22 = vmax.f32 %v613_v19, 0.0  ;;  %v1378_v19 = vld [vmem:[%s1912_s7] ss:$0 sm:$0xff] }
 0x154   : > { %v614_v20 = vpop.f32.mrf.mxu0 }
 0x155   : > { %v615_v21 = vadd.f32 %v1840_v25, %v614_v20 }
 0x157   : > { %v632_v23 = vmax.f32 %v615_v21, 0.0 }
 0x159   : > { %v640_v24 = vpack.c.bf16 %v632_v23, %v631_v22 }
 0x15b   : > { %752 = vmatmul.bf16.gmra.mxu1 %v640_v24 }
 0x168   : > { %v718_v26 = vpop.f32.mrf.mxu1 }
 0x169   : > { %v719_v28 = vadd.f32 %v1377_v27, %v718_v26 }
 0x16b   : > { %v758_v31 = vmax.f32 %v719_v28, 0.0 }
 0x170   : > { %v720_v29 = vpop.f32.mrf.mxu1 }
 0x171   : > { %v721_v30 = vadd.f32 %v1377_v27, %v720_v29 }
 0x173   : > { %v759_v32 = vmax.f32 %v721_v30, 0.0 }
 0x175   : > { %v774_v33 = vpack.c.bf16 %v759_v32, %v758_v31 }
 0x177   : > { %858 = vmatmul.bf16.vlgmr.msra.gmra.mxu2 %v774_v33 }
 0x178   : > { %v723_v34 = vpop.f32.mrf.mxu1 }
 0x179   : > { %v724_v35 = vadd.f32 %v1377_v27, %v723_v34 }
 0x17b   : > { %v760_v37 = vmax.f32 %v724_v35, 0.0 }
 0x180   : > { %v725_v36 = vpop.f32.mrf.mxu1 }
 0x181   : > { %v726_v25 = vadd.f32 %v1377_v27, %v725_v36 }
 0x183   : > { %v761_v38 = vmax.f32 %v726_v25, 0.0 }
 0x185   : > { %v775_v39 = vpack.c.bf16 %v761_v38, %v760_v37 }
 0x187   : > { %863 = vmatmul.bf16.gmra.mxu2 %v775_v39 }
 0x188   : > { %v728_v40 = vpop.f32.mrf.mxu1 }
 0x189   : > { %v729_v41 = vadd.f32 %v1377_v27, %v728_v40 }
 0x18b   : > { %v762_v44 = vmax.f32 %v729_v41, 0.0 }
 0x190   : > { %v730_v42 = vpop.f32.mrf.mxu1 }
 0x191   : > { %v731_v43 = vadd.f32 %v1377_v27, %v730_v42 }
 0x193   : > { %v763_v45 = vmax.f32 %v731_v43, 0.0 }
 0x195   : > { %v776_v46 = vpack.c.bf16 %v763_v45, %v762_v44 }
 0x197   : > { %868 = vmatmul.bf16.gmra.mxu2 %v776_v46 }
 0x198   : > { %v733_v47 = vpop.f32.mrf.mxu1 }
 0x199   : > { %v734_v48 = vadd.f32 %v1377_v27, %v733_v47 }
 0x19b   : > { %v764_v51 = vmax.f32 %v734_v48, 0.0 }
 0x1a0   : > { %v735_v49 = vpop.f32.mrf.mxu1 }
 0x1a1   : > { %v736_v50 = vadd.f32 %v1377_v27, %v735_v49 }
 0x1a3   : > { %v765_v52 = vmax.f32 %v736_v50, 0.0 }
 0x1a5   : > { %v777_v53 = vpack.c.bf16 %v765_v52, %v764_v51 }
 0x1a7   : > { %873 = vmatmul.bf16.gmra.mxu2 %v777_v53 }
 0x1a8   : > { %v738_v54 = vpop.f32.mrf.mxu1 }
 0x1a9   : > { %v739_v55 = vadd.f32 %v1377_v27, %v738_v54 }
 0x1ab   : > { %v766_v58 = vmax.f32 %v739_v55, 0.0 }
 0x1b0   : > { %v740_v56 = vpop.f32.mrf.mxu1 }
 0x1b1   : > { %v741_v57 = vadd.f32 %v1377_v27, %v740_v56 }
 0x1b3   : > { %v767_v59 = vmax.f32 %v741_v57, 0.0 }
 0x1b5   : > { %v778_v60 = vpack.c.bf16 %v767_v59, %v766_v58 }
 0x1b7   : > { %878 = vmatmul.bf16.gmra.mxu2 %v778_v60 }
 0x1b8   : > { %v743_v61 = vpop.f32.mrf.mxu1 }
 0x1b9   : > { %v744_v62 = vadd.f32 %v1377_v27, %v743_v61 }
 0x1bb   : > { %v768_v1 = vmax.f32 %v744_v62, 0.0 }
 0x1c0   : > { %v745_v63 = vpop.f32.mrf.mxu1 }
 0x1c1   : > { %v746_v0 = vadd.f32 %v1377_v27, %v745_v63 }
 0x1c3   : > { %v769_v2 = vmax.f32 %v746_v0, 0.0 }
 0x1c5   : > { %v779_v3 = vpack.c.bf16 %v769_v2, %v768_v1 }
 0x1c7   : > { %883 = vmatmul.bf16.gmra.mxu2 %v779_v3 }
 0x1c8   : > { %v748_v4 = vpop.f32.mrf.mxu1 }
 0x1c9   : > { %v749_v5 = vadd.f32 %v1377_v27, %v748_v4 }
 0x1cb   : > { %v770_v8 = vmax.f32 %v749_v5, 0.0 }
 0x1d0   : > { %v750_v6 = vpop.f32.mrf.mxu1 }
 0x1d1   : > { %v751_v7 = vadd.f32 %v1377_v27, %v750_v6 }
 0x1d3   : > { %v771_v9 = vmax.f32 %v751_v7, 0.0 }
 0x1d5   : > { %v780_v10 = vpack.c.bf16 %v771_v9, %v770_v8 }
 0x1d7   : > { %888 = vmatmul.bf16.gmra.mxu2 %v780_v10 }
 0x1d8   : > { %v753_v11 = vpop.f32.mrf.mxu1 }
 0x1d9   : > { %v754_v12 = vadd.f32 %v1377_v27, %v753_v11  ;;  %v924_v11 = vlaneseq }
 0x1db   : > { %v772_v15 = vmax.f32 %v754_v12, 0.0  ;;  %v925_v12 = vshrl.u32 %v924_v11, 7 }
 0x1e0   : > { %v755_v13 = vpop.f32.mrf.mxu1 }
 0x1e1   : > { %v756_v14 = vadd.f32 %v1377_v27, %v755_v13  ;;  %v1379_v13 = vld [vmem:[%s375_s14] ss:$0 sm:$0xff]  ;;  %s1550_s14 = scalar_lea.hbm %s1941_s20, 16 }
 0x1e2   : > { %vm927_vm0 = vcmp.eq.s32.totalorder %v925_v12, %v1379_v13  ;;  %p1552_p12 = scmp.lt.s32.totalorder %s1550_s14, %s1546_s8 }
 0x1e3   : > { %v773_v16 = vmax.f32 %v756_v14, 0.0  ;;  %vm1235_vm1 = vmpackc.low %vm927_vm0, %vm927_vm0  ;;  %v1631_v14 = vmov 1.0|1.0  }
 0x1e4   : > { %p1553_p13 = por %p1552_p12, %p1551_p10 }
 0x1e5   : > { %v781_v17 = vpack.c.bf16 %v773_v16, %v772_v15 }
 0x1e6   : > { %p1554_p0 = pnand %p1553_p13, %p1549_p8 }
 0x1e7   : > { %893 = vmatmul.bf16.gmra.mxu2 %v781_v17 }
 0x1fa   : > { %v859_v18 = vpop.f32.mrf.mxu2 }
 0x1fb   : > { %v860_v20 = vadd.f32 %v1378_v19, %v859_v18 }
 0x1fd   : > { %v899_v23 = vmax.f32 %v860_v20, 0.0 }
 0x202   : > { %v861_v21 = vpop.f32.mrf.mxu2 }
 0x203   : > { %v862_v22 = vadd.f32 %v1378_v19, %v861_v21 }
 0x205   : > { %v900_v24 = vmax.f32 %v862_v22, 0.0 }
 0x207   : > { %v915_v26 = vpack.c.bf16 %v900_v24, %v899_v23 }
 0x20a   : > { %v864_v28 = vpop.f32.mrf.mxu2 }
 0x20b   : > { %v865_v29 = vadd.f32 %v1378_v19, %v864_v28 }
 0x20d   : > { %v901_v27 = vmax.f32 %v865_v29, 0.0 }
 0x212   : > { %v866_v30 = vpop.f32.mrf.mxu2 }
 0x213   : > { %v867_v31 = vadd.f32 %v1378_v19, %v866_v30 }
 0x215   : > { %v902_v32 = vmax.f32 %v867_v31, 0.0 }
 0x217   : > { %v916_v33 = vpack.c.bf16 %v902_v32, %v901_v27 }
 0x21a   : > { %v869_v34 = vpop.f32.mrf.mxu2 }
 0x21b   : > { %v870_v35 = vadd.f32 %v1378_v19, %v869_v34 }
 0x21d   : > { %v903_v37 = vmax.f32 %v870_v35, 0.0 }
 0x222   : > { %v871_v36 = vpop.f32.mrf.mxu2 }
 0x223   : > { %v872_v25 = vadd.f32 %v1378_v19, %v871_v36 }
 0x225   : > { %v904_v38 = vmax.f32 %v872_v25, 0.0 }
 0x227   : > { %v917_v39 = vpack.c.bf16 %v904_v38, %v903_v37 }
 0x22a   : > { %v874_v40 = vpop.f32.mrf.mxu2 }
 0x22b   : > { %v875_v41 = vadd.f32 %v1378_v19, %v874_v40 }
 0x22d   : > { %v905_v44 = vmax.f32 %v875_v41, 0.0 }
 0x232   : > { %v876_v42 = vpop.f32.mrf.mxu2 }
 0x233   : > { %v877_v43 = vadd.f32 %v1378_v19, %v876_v42 }
 0x235   : > { %v906_v45 = vmax.f32 %v877_v43, 0.0 }
 0x237   : > { %v918_v46 = vpack.c.bf16 %v906_v45, %v905_v44 }
 0x23a   : > { %v879_v47 = vpop.f32.mrf.mxu2 }
 0x23b   : > { %v880_v5 = vadd.f32 %v1378_v19, %v879_v47 }
 0x23d   : > { %v907_v9 = vmax.f32 %v880_v5, 0.0 }
 0x242   : > { %v881_v48 = vpop.f32.mrf.mxu2 }
 0x243   : > { %v882_v2 = vadd.f32 %v1378_v19, %v881_v48 }
 0x245   : > { %v908_v7 = vmax.f32 %v882_v2, 0.0 }
 0x247   : > { %v919_v10 = vpack.c.bf16 %v908_v7, %v907_v9 }
 0x24a   : > { %v884_v49 = vpop.f32.mrf.mxu2 }
 0x24b   : > { %v885_v0 = vadd.f32 %v1378_v19, %v884_v49 }
 0x24d   : > { %v909_v6 = vmax.f32 %v885_v0, 0.0 }
 0x252   : > { %v886_v50 = vpop.f32.mrf.mxu2 }
 0x253   : > { %v887_v61 = vadd.f32 %v1378_v19, %v886_v50 }
 0x255   : > { %v910_v3 = vmax.f32 %v887_v61, 0.0 }
 0x257   : > { %v920_v8 = vpack.c.bf16 %v910_v3, %v909_v6 }
 0x25a   : > { %v889_v51 = vpop.f32.mrf.mxu2 }
 0x25b   : > { %v890_v58 = vadd.f32 %v1378_v19, %v889_v51 }
 0x25d   : > { %v911_v1 = vmax.f32 %v890_v58, 0.0 }
 0x262   : > { %v891_v52 = vpop.f32.mrf.mxu2 }
 0x263   : > { %v892_v56 = vadd.f32 %v1378_v19, %v891_v52 }
 0x265   : > { %v912_v62 = vmax.f32 %v892_v56, 0.0 }
 0x267   : > { %v921_v4 = vpack.c.bf16 %v912_v62, %v911_v1 }
 0x26a   : > { %v894_v53 = vpop.f32.mrf.mxu2 }
 0x26b   : > { %v895_v54 = vadd.f32 %v1378_v19, %v894_v53 }
 0x26d   : > { %v913_v59 = vmax.f32 %v895_v54, 0.0 }
 0x272   : > { %v896_v55 = vpop.f32.mrf.mxu2 }
 0x273   : > { %v897_v57 = vadd.f32 %v1378_v19, %v896_v55 }
 0x275   : > { %v914_v60 = vmax.f32 %v897_v57, 0.0 }
 0x277   : > { %v922_v63 = vpack.c.bf16 %v914_v60, %v913_v59 }
 0x279   : > { %932 = vmatpush.bf16.msra.mxu3 %v922_v63 }
 0x27d   : > { %933 = vmatpush.bf16.msra.mxu3 %v921_v4 }
 0x281   : > { %934 = vmatpush.bf16.msra.mxu3 %v920_v8 }
 0x285   : > { %935 = vmatpush.bf16.msra.mxu3 %v919_v10 }
 0x289   : > { %936 = vmatpush.bf16.msra.mxu3 %v918_v46 }
 0x28d   : > { %937 = vmatpush.bf16.msra.mxu3 %v917_v39 }
 0x291   : > { %938 = vmatpush.bf16.msra.mxu3 %v916_v33 }
 0x295   : > { %939 = vmatpush.bf16.msra.mxu3 %v915_v26 }
 0x298   : > { %1236 = vmatmul.msk.bf16.vlgmr.msra.gmra.mxu3 %vm1235_vm1, %v1631_v14 }
 0x31b   : > { %v941_v15 = vpop.f32.mrf.mxu3 }
 0x31c   : > { %946 = vst [vmem:[%s427_s19] sm:$0xff] %v941_v15 }
 0x31d   : > { %1557 = shalt.err (!%p1554_p0)
}
 0x31e   : > { %1290 = dma.vmem_to_hbm [thread:$0]  (%p1777_p5), %s961_s25, 128, %s963_s4, %s948_s6  }
 0x323   : > { %v943_v16 = vpop.f32.mrf.mxu3 }
 0x324 PF: > { %s1942_s26 = sld [smem:[#allocation17_spill]]  ;;  %p1310_p3 = pnand %p1096_p11, %p1722_p6 }
 0x326   : > { %p1311_p7 = pneg %p1310_p3 }
 0x32a   : > { %s974_s17 = sand.u32 1, %s1942_s26  }
 0x32b   : > { %s975_s24 = scalar_lea.sflag [#allocation4], %s974_s17 }
 0x32c   : > { %1599 = dma.done.wait (%p1311_p7), %s975_s24, 128  }
 0x32d   : > { %1601 = vsyncadd (%p1311_p7), %s975_s24, 4294967168  ;;  %s28_s10 = sadd.s32 1, %s1624_s10   ;;  %s1944_s12 = sld [smem:[#allocation18_spill]] }
 0x32e   : > { %p25_p9 = scmp.ge.s32.totalorder %s28_s10, 4   ;;  %s1945_s29 = sld [smem:[#allocation21_spill]] }
 0x32f   : > { %s1946_s21 = sld [smem:[#allocation20_spill]]  ;;  %s1947_s27 = smov %s1608_s28 }
 0x330   : > { %s1949_s30 = smov %s1620_s9 }
 0x331   :  { %27 = sbr.rel (!%p25_p9) target bundleno = 14 (0xe), region = 126 }
 0x333   : > { %s1948_s28 = smov %s1944_s12 }
 0x335   : > { %s1950_s9 = smov %s1946_s21 }
 0x336   :  { %981 = vsyncpa [#allocation3], 1 }
 0x337   :  { %983 = vsyncpa [#allocation3 + $0x1], 1 }
 0x338   :  { %984 = vsyncpa [#allocation6], 1 }
 0x339   :  { %986 = vsyncpa [#allocation6 + $0x1], 1 }
 0x33a   :  { %987 = vsyncpa [#allocation9], 1 }
 0x33b   :  { %988 = vsyncpa [#allocation4], 1 }
 0x33c   :  { %990 = vsyncpa [#allocation4 + $0x1], 1 }

</bundles_post_ra>
